<compile_context>
chip_gen: v5e
topology: v5e:2x2
jax: 0.10.0
libtpu: 0.0.40
codegen_flags: <defaults>
</compile_context>

<pallas_src>
import jax
import jax.numpy as jnp
from jax.experimental import pallas as pl
from jax.experimental.pallas import tpu as pltpu

EMBED_DIM = 32   # config.EMBED_DIM (small synthetic value)
NUM_NODES = 16   # number of graph nodes in the example
NUM_LAYERS = 4   # convD1, convD2, convS1, convS2


def net2_kernel(x_idx_ref, drug_idx_ref, se_idx_ref,      # SMEM int32 indices
                emb_ref, a_drug_ref, a_se_ref,            # VMEM f32
                wl_ref, wr_ref, b_ref,                    # VMEM f32 (stacked per layer)
                x_out_ref, drug_out_ref, se_out_ref):     # VMEM f32 outputs
    """Whole Net2.forward in one kernel: gather -> 4x (SAGEConv+ReLU) -> gathers.

    x is carried as a value across the unrolled layers; the (N, D) output buffer
    doubles as the staging buffer for the embedding gather and as the source for
    the final drug/se row gathers (all resident in VMEM).
    """
    N, D = x_out_ref.shape

    # --- embedding lookup (x = embedding[x_idx]) : dynamic row loads, static row stores ---
    for i in range(N):
        idx = x_idx_ref[i]
        x_out_ref[pl.ds(i, 1), :] = emb_ref[pl.ds(idx, 1), :]
    x = x_out_ref[...]                                   # [N, D] f32

    a_drug = a_drug_ref[...]
    a_se = a_se_ref[...]

    # --- 4 SAGEConv + ReLU layers, no HBM round-trips, no scratch round-trips ---
    for layer in range(NUM_LAYERS):
        a = a_drug if layer < 2 else a_se
        agg = jnp.dot(a, x, preferred_element_type=jnp.float32)        # mean aggregation
        out = (jnp.dot(agg, wl_ref[layer], preferred_element_type=jnp.float32)
               + jnp.dot(x, wr_ref[layer], preferred_element_type=jnp.float32)
               + b_ref[layer])
        x = jnp.maximum(out, 0.0)                                      # ReLU (VPU)
    x_out_ref[...] = x

    # --- output node gathers (drugEmbedding = x[drugNodes], seEmbedding = x[seNodes]) ---
    for k in range(drug_out_ref.shape[0]):
        d = drug_idx_ref[k]
        drug_out_ref[pl.ds(k, 1), :] = x_out_ref[pl.ds(d, 1), :]
    for k in range(se_out_ref.shape[0]):
        s = se_idx_ref[k]
        se_out_ref[pl.ds(k, 1), :] = x_out_ref[pl.ds(s, 1), :]


def net2_pallas_forward(embedding, A_drug, A_se, wl_t, wr_t, b_row,
                        x_idx_flat, drug_nodes, se_nodes):
    """Single pallas_call covering the entire Net2 forward."""
    N, D = A_drug.shape[0], embedding.shape[1]
    n_drug, n_se = drug_nodes.shape[0], se_nodes.shape[0]
    smem = pl.BlockSpec(memory_space=pltpu.MemorySpace.SMEM)
    vmem = pl.BlockSpec(memory_space=pltpu.MemorySpace.VMEM)

    flops = NUM_LAYERS * (2 * N * N * D + 2 * 2 * N * D * D)
    bytes_accessed = (
        4 * (embedding.size + A_drug.size + A_se.size
             + wl_t.size + wr_t.size + b_row.size
             + N * D + n_drug * D + n_se * D)                 # f32 tensors
        + 4 * (x_idx_flat.size + drug_nodes.size + se_nodes.size))  # int32 indices

    x_out, drug_out, se_out = pl.pallas_call(
        net2_kernel,
        out_shape=(jax.ShapeDtypeStruct((N, D), jnp.float32),
                   jax.ShapeDtypeStruct((n_drug, D), jnp.float32),
                   jax.ShapeDtypeStruct((n_se, D), jnp.float32)),
        in_specs=[smem, smem, smem, vmem, vmem, vmem, vmem, vmem, vmem],
        out_specs=(vmem, vmem, vmem),
        cost_estimate=pl.CostEstimate(
            flops=flops, transcendentals=0, bytes_accessed=bytes_accessed),
    )(x_idx_flat, drug_nodes, se_nodes, embedding, A_drug, A_se, wl_t, wr_t, b_row)
    return drug_out, se_out, x_out


def build_mean_adj(edge_index, num_nodes):
    """Dense row-normalized adjacency: A[i, j] = 1/deg_in(i) if edge j->i (mean aggr).

    Built ONCE for the static graph (hoisted out of the jitted forward).
    """
    src, dst = edge_index[0], edge_index[1]
    A = jnp.zeros((num_nodes, num_nodes), jnp.float32).at[dst, src].add(1.0)
    deg = A.sum(axis=1, keepdims=True)
    return A / jnp.maximum(deg, 1.0)


def init_params(key, embed_dim, num_node):
    """Mirror Net2.__init__ for the pieces used in forward().

    Keeps the ORIGINAL per-layer Wl / Wr (D, D) matrices so the reference can
    validate against the untransposed formulation; the transposed stacks that the
    kernel consumes are derived once in prepare_kernel_weights().
    (Uniform(-1/sqrt(D), 1/sqrt(D)) init, not PyG glorot -- values only.)
    """
    ks = jax.random.split(key, 1 + NUM_LAYERS)
    emb = jax.random.uniform(ks[0], (num_node + 1, embed_dim),
                             minval=0.001, maxval=0.3, dtype=jnp.float32)
    scale = 1.0 / float(jnp.sqrt(embed_dim))
    Wl, Wr, b = [], [], []
    for l in range(NUM_LAYERS):
        k1, k2, k3 = jax.random.split(ks[1 + l], 3)
        Wl.append(jax.random.uniform(k1, (embed_dim, embed_dim),
                                     minval=-scale, maxval=scale, dtype=jnp.float32))
        Wr.append(jax.random.uniform(k2, (embed_dim, embed_dim),
                                     minval=-scale, maxval=scale, dtype=jnp.float32))
        b.append(jax.random.uniform(k3, (embed_dim,),
                                    minval=-scale, maxval=scale, dtype=jnp.float32))
    return {
        "embedding": emb,
        "Wl": jnp.stack(Wl),          # (4, D, D), PyTorch convention out = in @ W.T
        "Wr": jnp.stack(Wr),          # (4, D, D)
        "b": jnp.stack(b),            # (4, D)
    }


def prepare_kernel_weights(params):
    """One-time layout prep (outside the jitted forward) for the fused kernel."""
    return {
        "wl_t": jnp.swapaxes(params["Wl"], 1, 2),   # (4, D, D): agg @ Wl^T
        "wr_t": jnp.swapaxes(params["Wr"], 1, 2),   # (4, D, D): x   @ Wr^T
        "b_row": params["b"][:, None, :],           # (4, 1, D)
    }


@jax.jit
def net2_forward(embedding, kweights, x_idx, A_drug, A_se, drug_nodes, se_nodes):
    # The whole forward is one kernel launch; only the trivial index flatten
    # (squeeze(1) of the node-id column) happens outside the kernel.
    x_idx_flat = x_idx.reshape(-1).astype(jnp.int32)
    return net2_pallas_forward(embedding, A_drug, A_se,
                               kweights["wl_t"], kweights["wr_t"], kweights["b_row"],
                               x_idx_flat,
                               drug_nodes.astype(jnp.int32),
                               se_nodes.astype(jnp.int32))


def reference_forward(params, x_idx, A_drug, A_se, drug_nodes, se_nodes):
    """Pure-JAX reference using the original (untransposed) Wl/Wr SAGEConv form."""
    x = jnp.squeeze(jnp.take(params["embedding"], x_idx, axis=0), axis=1)
    for layer in range(NUM_LAYERS):
        A = A_drug if layer < 2 else A_se
        agg = A @ x
        out = agg @ params["Wl"][layer].T + x @ params["Wr"][layer].T + params["b"][layer]
        x = jnp.maximum(out, 0.0)
    return x[drug_nodes], x[se_nodes], x


if __name__ == "__main__":
    key = jax.random.PRNGKey(0)
    k_param, k_de, k_se = jax.random.split(key, 3)

    params = init_params(k_param, EMBED_DIM, num_node=NUM_NODES)
    kweights = prepare_kernel_weights(params)

    # Node-id input (shape [N, 1], like the PyTorch module before squeeze(1))
    x_idx = jnp.arange(NUM_NODES, dtype=jnp.int32).reshape(NUM_NODES, 1)

    # Random edge lists [2, E] (source row 0, target row 1)
    n_edges = 24
    drug_edges = jax.random.randint(k_de, (2, n_edges), 0, NUM_NODES, dtype=jnp.int32)
    se_edges = jax.random.randint(k_se, (2, n_edges), 0, NUM_NODES, dtype=jnp.int32)

    # Static graph: build the dense mean-aggregation adjacencies once, up front.
    A_drug = build_mean_adj(drug_edges, NUM_NODES)
    A_se = build_mean_adj(se_edges, NUM_NODES)

    drug_nodes = jnp.array([0, 1, 2, 3], dtype=jnp.int32)
    se_nodes = jnp.array([8, 9, 10, 11], dtype=jnp.int32)

    drug_emb, se_emb, x_out = net2_forward(
        params["embedding"], kweights, x_idx, A_drug, A_se, drug_nodes, se_nodes)
    jax.block_until_ready((drug_emb, se_emb, x_out))

    assert drug_emb.shape == (4, EMBED_DIM)
    assert se_emb.shape == (4, EMBED_DIM)
    assert x_out.shape == (NUM_NODES, EMBED_DIM)

    ref_d, ref_s, ref_x = reference_forward(
        params, x_idx, A_drug, A_se, drug_nodes, se_nodes)
    assert jnp.allclose(x_out, ref_x, rtol=1e-3, atol=1e-3)
    assert jnp.allclose(drug_emb, ref_d, rtol=1e-3, atol=1e-3)
    assert jnp.allclose(se_emb, ref_s, rtol=1e-3, atol=1e-3)

    # TODO(synk): cal()/cal2() (linear1/linear2 score heads) are not part of
    # Net2.forward(); not implemented here.
    print("KERNEL_OK")
</pallas_src>

<mosaic_0001>
module attributes {stable_mosaic.version = 11 : i64} {
  func.func @net2_kernel(%arg0: memref<16xi32, #tpu.memory_space<smem>>, %arg1: memref<4xi32, #tpu.memory_space<smem>>, %arg2: memref<4xi32, #tpu.memory_space<smem>>, %arg3: memref<17x32xf32, #tpu.memory_space<vmem>>, %arg4: memref<16x16xf32, #tpu.memory_space<vmem>>, %arg5: memref<16x16xf32, #tpu.memory_space<vmem>>, %arg6: memref<4x32x32xf32, #tpu.memory_space<vmem>>, %arg7: memref<4x32x32xf32, #tpu.memory_space<vmem>>, %arg8: memref<4x1x32xf32, #tpu.memory_space<vmem>>, %arg9: memref<16x32xf32, #tpu.memory_space<vmem>>, %arg10: memref<4x32xf32, #tpu.memory_space<vmem>>, %arg11: memref<4x32xf32, #tpu.memory_space<vmem>>) attributes {dimension_semantics = [], scalar_prefetch = 0 : i64, scratch_operands = 0 : i64, tpu.core_type = #tpu.core_type<tc>} {
    %c0 = arith.constant 0 : index
    %0 = memref.load %arg0[%c0] : memref<16xi32, #tpu.memory_space<smem>>
    %1 = arith.index_cast %0 : i32 to index
    %c0_0 = arith.constant 0 : index
    %2 = vector.load %arg3[%1, %c0_0] : memref<17x32xf32, #tpu.memory_space<vmem>>, vector<1x32xf32>
    %c0_1 = arith.constant 0 : index
    %c0_2 = arith.constant 0 : index
    %3 = vector.load %arg9[%c0_1, %c0_2] : memref<16x32xf32, #tpu.memory_space<vmem>>, vector<1x32xf32>
    tpu.vector_store %arg9[%c0_1, %c0_2], %2 {strides = array<i32>} : memref<16x32xf32, #tpu.memory_space<vmem>>, vector<1x32xf32>,
    %c1 = arith.constant 1 : index
    %4 = memref.load %arg0[%c1] : memref<16xi32, #tpu.memory_space<smem>>
    %5 = arith.index_cast %4 : i32 to index
    %c0_3 = arith.constant 0 : index
    %6 = vector.load %arg3[%5, %c0_3] : memref<17x32xf32, #tpu.memory_space<vmem>>, vector<1x32xf32>
    %c1_4 = arith.constant 1 : index
    %c0_5 = arith.constant 0 : index
    %7 = vector.load %arg9[%c1_4, %c0_5] : memref<16x32xf32, #tpu.memory_space<vmem>>, vector<1x32xf32>
    tpu.vector_store %arg9[%c1_4, %c0_5], %6 {strides = array<i32>} : memref<16x32xf32, #tpu.memory_space<vmem>>, vector<1x32xf32>,
    %c2 = arith.constant 2 : index
    %8 = memref.load %arg0[%c2] : memref<16xi32, #tpu.memory_space<smem>>
    %9 = arith.index_cast %8 : i32 to index
    %c0_6 = arith.constant 0 : index
    %10 = vector.load %arg3[%9, %c0_6] : memref<17x32xf32, #tpu.memory_space<vmem>>, vector<1x32xf32>
    %c2_7 = arith.constant 2 : index
    %c0_8 = arith.constant 0 : index
    %11 = vector.load %arg9[%c2_7, %c0_8] : memref<16x32xf32, #tpu.memory_space<vmem>>, vector<1x32xf32>
    tpu.vector_store %arg9[%c2_7, %c0_8], %10 {strides = array<i32>} : memref<16x32xf32, #tpu.memory_space<vmem>>, vector<1x32xf32>,
    %c3 = arith.constant 3 : index
    %12 = memref.load %arg0[%c3] : memref<16xi32, #tpu.memory_space<smem>>
    %13 = arith.index_cast %12 : i32 to index
    %c0_9 = arith.constant 0 : index
    %14 = vector.load %arg3[%13, %c0_9] : memref<17x32xf32, #tpu.memory_space<vmem>>, vector<1x32xf32>
    %c3_10 = arith.constant 3 : index
    %c0_11 = arith.constant 0 : index
    %15 = vector.load %arg9[%c3_10, %c0_11] : memref<16x32xf32, #tpu.memory_space<vmem>>, vector<1x32xf32>
    tpu.vector_store %arg9[%c3_10, %c0_11], %14 {strides = array<i32>} : memref<16x32xf32, #tpu.memory_space<vmem>>, vector<1x32xf32>,
    %c4 = arith.constant 4 : index
    %16 = memref.load %arg0[%c4] : memref<16xi32, #tpu.memory_space<smem>>
    %17 = arith.index_cast %16 : i32 to index
    %c0_12 = arith.constant 0 : index
    %18 = vector.load %arg3[%17, %c0_12] : memref<17x32xf32, #tpu.memory_space<vmem>>, vector<1x32xf32>
    %c4_13 = arith.constant 4 : index
    %c0_14 = arith.constant 0 : index
    %19 = vector.load %arg9[%c4_13, %c0_14] : memref<16x32xf32, #tpu.memory_space<vmem>>, vector<1x32xf32>
    tpu.vector_store %arg9[%c4_13, %c0_14], %18 {strides = array<i32>} : memref<16x32xf32, #tpu.memory_space<vmem>>, vector<1x32xf32>,
    %c5 = arith.constant 5 : index
    %20 = memref.load %arg0[%c5] : memref<16xi32, #tpu.memory_space<smem>>
    %21 = arith.index_cast %20 : i32 to index
    %c0_15 = arith.constant 0 : index
    %22 = vector.load %arg3[%21, %c0_15] : memref<17x32xf32, #tpu.memory_space<vmem>>, vector<1x32xf32>
    %c5_16 = arith.constant 5 : index
    %c0_17 = arith.constant 0 : index
    %23 = vector.load %arg9[%c5_16, %c0_17] : memref<16x32xf32, #tpu.memory_space<vmem>>, vector<1x32xf32>
    tpu.vector_store %arg9[%c5_16, %c0_17], %22 {strides = array<i32>} : memref<16x32xf32, #tpu.memory_space<vmem>>, vector<1x32xf32>,
    %c6 = arith.constant 6 : index
    %24 = memref.load %arg0[%c6] : memref<16xi32, #tpu.memory_space<smem>>
    %25 = arith.index_cast %24 : i32 to index
    %c0_18 = arith.constant 0 : index
    %26 = vector.load %arg3[%25, %c0_18] : memref<17x32xf32, #tpu.memory_space<vmem>>, vector<1x32xf32>
    %c6_19 = arith.constant 6 : index
    %c0_20 = arith.constant 0 : index
    %27 = vector.load %arg9[%c6_19, %c0_20] : memref<16x32xf32, #tpu.memory_space<vmem>>, vector<1x32xf32>
    tpu.vector_store %arg9[%c6_19, %c0_20], %26 {strides = array<i32>} : memref<16x32xf32, #tpu.memory_space<vmem>>, vector<1x32xf32>,
    %c7 = arith.constant 7 : index
    %28 = memref.load %arg0[%c7] : memref<16xi32, #tpu.memory_space<smem>>
    %29 = arith.index_cast %28 : i32 to index
    %c0_21 = arith.constant 0 : index
    %30 = vector.load %arg3[%29, %c0_21] : memref<17x32xf32, #tpu.memory_space<vmem>>, vector<1x32xf32>
    %c7_22 = arith.constant 7 : index
    %c0_23 = arith.constant 0 : index
    %31 = vector.load %arg9[%c7_22, %c0_23] : memref<16x32xf32, #tpu.memory_space<vmem>>, vector<1x32xf32>
    tpu.vector_store %arg9[%c7_22, %c0_23], %30 {strides = array<i32>} : memref<16x32xf32, #tpu.memory_space<vmem>>, vector<1x32xf32>,
    %c8 = arith.constant 8 : index
    %32 = memref.load %arg0[%c8] : memref<16xi32, #tpu.memory_space<smem>>
    %33 = arith.index_cast %32 : i32 to index
    %c0_24 = arith.constant 0 : index
    %34 = vector.load %arg3[%33, %c0_24] : memref<17x32xf32, #tpu.memory_space<vmem>>, vector<1x32xf32>
    %c8_25 = arith.constant 8 : index
    %c0_26 = arith.constant 0 : index
    %35 = vector.load %arg9[%c8_25, %c0_26] : memref<16x32xf32, #tpu.memory_space<vmem>>, vector<1x32xf32>
    tpu.vector_store %arg9[%c8_25, %c0_26], %34 {strides = array<i32>} : memref<16x32xf32, #tpu.memory_space<vmem>>, vector<1x32xf32>,
    %c9 = arith.constant 9 : index
    %36 = memref.load %arg0[%c9] : memref<16xi32, #tpu.memory_space<smem>>
    %37 = arith.index_cast %36 : i32 to index
    %c0_27 = arith.constant 0 : index
    %38 = vector.load %arg3[%37, %c0_27] : memref<17x32xf32, #tpu.memory_space<vmem>>, vector<1x32xf32>
    %c9_28 = arith.constant 9 : index
    %c0_29 = arith.constant 0 : index
    %39 = vector.load %arg9[%c9_28, %c0_29] : memref<16x32xf32, #tpu.memory_space<vmem>>, vector<1x32xf32>
    tpu.vector_store %arg9[%c9_28, %c0_29], %38 {strides = array<i32>} : memref<16x32xf32, #tpu.memory_space<vmem>>, vector<1x32xf32>,
    %c10 = arith.constant 10 : index
    %40 = memref.load %arg0[%c10] : memref<16xi32, #tpu.memory_space<smem>>
    %41 = arith.index_cast %40 : i32 to index
    %c0_30 = arith.constant 0 : index
    %42 = vector.load %arg3[%41, %c0_30] : memref<17x32xf32, #tpu.memory_space<vmem>>, vector<1x32xf32>
    %c10_31 = arith.constant 10 : index
    %c0_32 = arith.constant 0 : index
    %43 = vector.load %arg9[%c10_31, %c0_32] : memref<16x32xf32, #tpu.memory_space<vmem>>, vector<1x32xf32>
    tpu.vector_store %arg9[%c10_31, %c0_32], %42 {strides = array<i32>} : memref<16x32xf32, #tpu.memory_space<vmem>>, vector<1x32xf32>,
    %c11 = arith.constant 11 : index
    %44 = memref.load %arg0[%c11] : memref<16xi32, #tpu.memory_space<smem>>
    %45 = arith.index_cast %44 : i32 to index
    %c0_33 = arith.constant 0 : index
    %46 = vector.load %arg3[%45, %c0_33] : memref<17x32xf32, #tpu.memory_space<vmem>>, vector<1x32xf32>
    %c11_34 = arith.constant 11 : index
    %c0_35 = arith.constant 0 : index
    %47 = vector.load %arg9[%c11_34, %c0_35] : memref<16x32xf32, #tpu.memory_space<vmem>>, vector<1x32xf32>
    tpu.vector_store %arg9[%c11_34, %c0_35], %46 {strides = array<i32>} : memref<16x32xf32, #tpu.memory_space<vmem>>, vector<1x32xf32>,
    %c12 = arith.constant 12 : index
    %48 = memref.load %arg0[%c12] : memref<16xi32, #tpu.memory_space<smem>>
    %49 = arith.index_cast %48 : i32 to index
    %c0_36 = arith.constant 0 : index
    %50 = vector.load %arg3[%49, %c0_36] : memref<17x32xf32, #tpu.memory_space<vmem>>, vector<1x32xf32>
    %c12_37 = arith.constant 12 : index
    %c0_38 = arith.constant 0 : index
    %51 = vector.load %arg9[%c12_37, %c0_38] : memref<16x32xf32, #tpu.memory_space<vmem>>, vector<1x32xf32>
    tpu.vector_store %arg9[%c12_37, %c0_38], %50 {strides = array<i32>} : memref<16x32xf32, #tpu.memory_space<vmem>>, vector<1x32xf32>,
    %c13 = arith.constant 13 : index
    %52 = memref.load %arg0[%c13] : memref<16xi32, #tpu.memory_space<smem>>
    %53 = arith.index_cast %52 : i32 to index
    %c0_39 = arith.constant 0 : index
    %54 = vector.load %arg3[%53, %c0_39] : memref<17x32xf32, #tpu.memory_space<vmem>>, vector<1x32xf32>
    %c13_40 = arith.constant 13 : index
    %c0_41 = arith.constant 0 : index
    %55 = vector.load %arg9[%c13_40, %c0_41] : memref<16x32xf32, #tpu.memory_space<vmem>>, vector<1x32xf32>
    tpu.vector_store %arg9[%c13_40, %c0_41], %54 {strides = array<i32>} : memref<16x32xf32, #tpu.memory_space<vmem>>, vector<1x32xf32>,
    %c14 = arith.constant 14 : index
    %56 = memref.load %arg0[%c14] : memref<16xi32, #tpu.memory_space<smem>>
    %57 = arith.index_cast %56 : i32 to index
    %c0_42 = arith.constant 0 : index
    %58 = vector.load %arg3[%57, %c0_42] : memref<17x32xf32, #tpu.memory_space<vmem>>, vector<1x32xf32>
    %c14_43 = arith.constant 14 : index
    %c0_44 = arith.constant 0 : index
    %59 = vector.load %arg9[%c14_43, %c0_44] : memref<16x32xf32, #tpu.memory_space<vmem>>, vector<1x32xf32>
    tpu.vector_store %arg9[%c14_43, %c0_44], %58 {strides = array<i32>} : memref<16x32xf32, #tpu.memory_space<vmem>>, vector<1x32xf32>,
    %c15 = arith.constant 15 : index
    %60 = memref.load %arg0[%c15] : memref<16xi32, #tpu.memory_space<smem>>
    %61 = arith.index_cast %60 : i32 to index
    %c0_45 = arith.constant 0 : index
    %62 = vector.load %arg3[%61, %c0_45] : memref<17x32xf32, #tpu.memory_space<vmem>>, vector<1x32xf32>
    %c15_46 = arith.constant 15 : index
    %c0_47 = arith.constant 0 : index
    %63 = vector.load %arg9[%c15_46, %c0_47] : memref<16x32xf32, #tpu.memory_space<vmem>>, vector<1x32xf32>
    tpu.vector_store %arg9[%c15_46, %c0_47], %62 {strides = array<i32>} : memref<16x32xf32, #tpu.memory_space<vmem>>, vector<1x32xf32>,
    %c0_48 = arith.constant 0 : index
    %c0_49 = arith.constant 0 : index
    %64 = vector.load %arg9[%c0_48, %c0_49] : memref<16x32xf32, #tpu.memory_space<vmem>>, vector<16x32xf32>
    %c0_50 = arith.constant 0 : index
    %c0_51 = arith.constant 0 : index
    %65 = vector.load %arg4[%c0_50, %c0_51] : memref<16x16xf32, #tpu.memory_space<vmem>>, vector<16x16xf32>
    %c0_52 = arith.constant 0 : index
    %c0_53 = arith.constant 0 : index
    %66 = vector.load %arg5[%c0_52, %c0_53] : memref<16x16xf32, #tpu.memory_space<vmem>>, vector<16x16xf32>
    %cst = arith.constant dense<0.000000e+00> : vector<16x32xf32>
    %67 = tpu.matmul %65, %64, %cst {dimension_numbers = #tpu.dot_dimension_numbers<[1], [0], [0], [1], [0, 0, 1, 1], [], []>} : vector<16x16xf32>, vector<16x32xf32>, vector<16x32xf32> -> vector<16x32xf32>
    %c0_54 = arith.constant 0 : index
    %c0_55 = arith.constant 0 : index
    %c0_56 = arith.constant 0 : index
    %68 = vector.load %arg6[%c0_54, %c0_55, %c0_56] : memref<4x32x32xf32, #tpu.memory_space<vmem>>, vector<1x32x32xf32>
    %69 = vector.shape_cast %68 : vector<1x32x32xf32> to vector<32x32xf32>
    %cst_57 = arith.constant dense<0.000000e+00> : vector<16x32xf32>
    %70 = tpu.matmul %67, %69, %cst_57 {dimension_numbers = #tpu.dot_dimension_numbers<[1], [0], [0], [1], [0, 0, 1, 1], [], []>} : vector<16x32xf32>, vector<32x32xf32>, vector<16x32xf32> -> vector<16x32xf32>
    %c0_58 = arith.constant 0 : index
    %c0_59 = arith.constant 0 : index
    %c0_60 = arith.constant 0 : index
    %71 = vector.load %arg7[%c0_58, %c0_59, %c0_60] : memref<4x32x32xf32, #tpu.memory_space<vmem>>, vector<1x32x32xf32>
    %72 = vector.shape_cast %71 : vector<1x32x32xf32> to vector<32x32xf32>
    %cst_61 = arith.constant dense<0.000000e+00> : vector<16x32xf32>
    %73 = tpu.matmul %64, %72, %cst_61 {dimension_numbers = #tpu.dot_dimension_numbers<[1], [0], [0], [1], [0, 0, 1, 1], [], []>} : vector<16x32xf32>, vector<32x32xf32>, vector<16x32xf32> -> vector<16x32xf32>
    %74 = arith.addf %70, %73 : vector<16x32xf32>
    %c0_62 = arith.constant 0 : index
    %c0_63 = arith.constant 0 : index
    %c0_64 = arith.constant 0 : index
    %75 = vector.load %arg8[%c0_62, %c0_63, %c0_64] : memref<4x1x32xf32, #tpu.memory_space<vmem>>, vector<1x1x32xf32>
    %76 = vector.shape_cast %75 : vector<1x1x32xf32> to vector<1x32xf32>
    %77 = vector.broadcast %76 : vector<1x32xf32> to vector<16x32xf32>
    %78 = arith.addf %74, %77 : vector<16x32xf32>
    %cst_65 = arith.constant 0.000000e+00 : f32
    %79 = vector.broadcast %cst_65 : f32 to vector<16x32xf32>
    %80 = arith.maximumf %78, %79 : vector<16x32xf32>
    %cst_66 = arith.constant dense<0.000000e+00> : vector<16x32xf32>
    %81 = tpu.matmul %65, %80, %cst_66 {dimension_numbers = #tpu.dot_dimension_numbers<[1], [0], [0], [1], [0, 0, 1, 1], [], []>} : vector<16x16xf32>, vector<16x32xf32>, vector<16x32xf32> -> vector<16x32xf32>
    %c1_67 = arith.constant 1 : index
    %c0_68 = arith.constant 0 : index
    %c0_69 = arith.constant 0 : index
    %82 = vector.load %arg6[%c1_67, %c0_68, %c0_69] : memref<4x32x32xf32, #tpu.memory_space<vmem>>, vector<1x32x32xf32>
    %83 = vector.shape_cast %82 : vector<1x32x32xf32> to vector<32x32xf32>
    %cst_70 = arith.constant dense<0.000000e+00> : vector<16x32xf32>
    %84 = tpu.matmul %81, %83, %cst_70 {dimension_numbers = #tpu.dot_dimension_numbers<[1], [0], [0], [1], [0, 0, 1, 1], [], []>} : vector<16x32xf32>, vector<32x32xf32>, vector<16x32xf32> -> vector<16x32xf32>
    %c1_71 = arith.constant 1 : index
    %c0_72 = arith.constant 0 : index
    %c0_73 = arith.constant 0 : index
    %85 = vector.load %arg7[%c1_71, %c0_72, %c0_73] : memref<4x32x32xf32, #tpu.memory_space<vmem>>, vector<1x32x32xf32>
    %86 = vector.shape_cast %85 : vector<1x32x32xf32> to vector<32x32xf32>
    %cst_74 = arith.constant dense<0.000000e+00> : vector<16x32xf32>
    %87 = tpu.matmul %80, %86, %cst_74 {dimension_numbers = #tpu.dot_dimension_numbers<[1], [0], [0], [1], [0, 0, 1, 1], [], []>} : vector<16x32xf32>, vector<32x32xf32>, vector<16x32xf32> -> vector<16x32xf32>
    %88 = arith.addf %84, %87 : vector<16x32xf32>
    %c1_75 = arith.constant 1 : index
    %c0_76 = arith.constant 0 : index
    %c0_77 = arith.constant 0 : index
    %89 = vector.load %arg8[%c1_75, %c0_76, %c0_77] : memref<4x1x32xf32, #tpu.memory_space<vmem>>, vector<1x1x32xf32>
    %90 = vector.shape_cast %89 : vector<1x1x32xf32> to vector<1x32xf32>
    %91 = vector.broadcast %90 : vector<1x32xf32> to vector<16x32xf32>
    %92 = arith.addf %88, %91 : vector<16x32xf32>
    %cst_78 = arith.constant 0.000000e+00 : f32
    %93 = vector.broadcast %cst_78 : f32 to vector<16x32xf32>
    %94 = arith.maximumf %92, %93 : vector<16x32xf32>
    %cst_79 = arith.constant dense<0.000000e+00> : vector<16x32xf32>
    %95 = tpu.matmul %66, %94, %cst_79 {dimension_numbers = #tpu.dot_dimension_numbers<[1], [0], [0], [1], [0, 0, 1, 1], [], []>} : vector<16x16xf32>, vector<16x32xf32>, vector<16x32xf32> -> vector<16x32xf32>
    %c2_80 = arith.constant 2 : index
    %c0_81 = arith.constant 0 : index
    %c0_82 = arith.constant 0 : index
    %96 = vector.load %arg6[%c2_80, %c0_81, %c0_82] : memref<4x32x32xf32, #tpu.memory_space<vmem>>, vector<1x32x32xf32>
    %97 = vector.shape_cast %96 : vector<1x32x32xf32> to vector<32x32xf32>
    %cst_83 = arith.constant dense<0.000000e+00> : vector<16x32xf32>
    %98 = tpu.matmul %95, %97, %cst_83 {dimension_numbers = #tpu.dot_dimension_numbers<[1], [0], [0], [1], [0, 0, 1, 1], [], []>} : vector<16x32xf32>, vector<32x32xf32>, vector<16x32xf32> -> vector<16x32xf32>
    %c2_84 = arith.constant 2 : index
    %c0_85 = arith.constant 0 : index
    %c0_86 = arith.constant 0 : index
    %99 = vector.load %arg7[%c2_84, %c0_85, %c0_86] : memref<4x32x32xf32, #tpu.memory_space<vmem>>, vector<1x32x32xf32>
    %100 = vector.shape_cast %99 : vector<1x32x32xf32> to vector<32x32xf32>
    %cst_87 = arith.constant dense<0.000000e+00> : vector<16x32xf32>
    %101 = tpu.matmul %94, %100, %cst_87 {dimension_numbers = #tpu.dot_dimension_numbers<[1], [0], [0], [1], [0, 0, 1, 1], [], []>} : vector<16x32xf32>, vector<32x32xf32>, vector<16x32xf32> -> vector<16x32xf32>
    %102 = arith.addf %98, %101 : vector<16x32xf32>
    %c2_88 = arith.constant 2 : index
    %c0_89 = arith.constant 0 : index
    %c0_90 = arith.constant 0 : index
    %103 = vector.load %arg8[%c2_88, %c0_89, %c0_90] : memref<4x1x32xf32, #tpu.memory_space<vmem>>, vector<1x1x32xf32>
    %104 = vector.shape_cast %103 : vector<1x1x32xf32> to vector<1x32xf32>
    %105 = vector.broadcast %104 : vector<1x32xf32> to vector<16x32xf32>
    %106 = arith.addf %102, %105 : vector<16x32xf32>
    %cst_91 = arith.constant 0.000000e+00 : f32
    %107 = vector.broadcast %cst_91 : f32 to vector<16x32xf32>
    %108 = arith.maximumf %106, %107 : vector<16x32xf32>
    %cst_92 = arith.constant dense<0.000000e+00> : vector<16x32xf32>
    %109 = tpu.matmul %66, %108, %cst_92 {dimension_numbers = #tpu.dot_dimension_numbers<[1], [0], [0], [1], [0, 0, 1, 1], [], []>} : vector<16x16xf32>, vector<16x32xf32>, vector<16x32xf32> -> vector<16x32xf32>
    %c3_93 = arith.constant 3 : index
    %c0_94 = arith.constant 0 : index
    %c0_95 = arith.constant 0 : index
    %110 = vector.load %arg6[%c3_93, %c0_94, %c0_95] : memref<4x32x32xf32, #tpu.memory_space<vmem>>, vector<1x32x32xf32>
    %111 = vector.shape_cast %110 : vector<1x32x32xf32> to vector<32x32xf32>
    %cst_96 = arith.constant dense<0.000000e+00> : vector<16x32xf32>
    %112 = tpu.matmul %109, %111, %cst_96 {dimension_numbers = #tpu.dot_dimension_numbers<[1], [0], [0], [1], [0, 0, 1, 1], [], []>} : vector<16x32xf32>, vector<32x32xf32>, vector<16x32xf32> -> vector<16x32xf32>
    %c3_97 = arith.constant 3 : index
    %c0_98 = arith.constant 0 : index
    %c0_99 = arith.constant 0 : index
    %113 = vector.load %arg7[%c3_97, %c0_98, %c0_99] : memref<4x32x32xf32, #tpu.memory_space<vmem>>, vector<1x32x32xf32>
    %114 = vector.shape_cast %113 : vector<1x32x32xf32> to vector<32x32xf32>
    %cst_100 = arith.constant dense<0.000000e+00> : vector<16x32xf32>
    %115 = tpu.matmul %108, %114, %cst_100 {dimension_numbers = #tpu.dot_dimension_numbers<[1], [0], [0], [1], [0, 0, 1, 1], [], []>} : vector<16x32xf32>, vector<32x32xf32>, vector<16x32xf32> -> vector<16x32xf32>
    %116 = arith.addf %112, %115 : vector<16x32xf32>
    %c3_101 = arith.constant 3 : index
    %c0_102 = arith.constant 0 : index
    %c0_103 = arith.constant 0 : index
    %117 = vector.load %arg8[%c3_101, %c0_102, %c0_103] : memref<4x1x32xf32, #tpu.memory_space<vmem>>, vector<1x1x32xf32>
    %118 = vector.shape_cast %117 : vector<1x1x32xf32> to vector<1x32xf32>
    %119 = vector.broadcast %118 : vector<1x32xf32> to vector<16x32xf32>
    %120 = arith.addf %116, %119 : vector<16x32xf32>
    %cst_104 = arith.constant 0.000000e+00 : f32
    %121 = vector.broadcast %cst_104 : f32 to vector<16x32xf32>
    %122 = arith.maximumf %120, %121 : vector<16x32xf32>
    %c0_105 = arith.constant 0 : index
    %c0_106 = arith.constant 0 : index
    %123 = vector.load %arg9[%c0_105, %c0_106] : memref<16x32xf32, #tpu.memory_space<vmem>>, vector<16x32xf32>
    tpu.vector_store %arg9[%c0_105, %c0_106], %122 {strides = array<i32>} : memref<16x32xf32, #tpu.memory_space<vmem>>, vector<16x32xf32>,
    %c0_107 = arith.constant 0 : index
    %124 = memref.load %arg1[%c0_107] : memref<4xi32, #tpu.memory_space<smem>>
    %125 = arith.index_cast %124 : i32 to index
    %c0_108 = arith.constant 0 : index
    %126 = vector.load %arg9[%125, %c0_108] : memref<16x32xf32, #tpu.memory_space<vmem>>, vector<1x32xf32>
    %c0_109 = arith.constant 0 : index
    %c0_110 = arith.constant 0 : index
    %127 = vector.load %arg10[%c0_109, %c0_110] : memref<4x32xf32, #tpu.memory_space<vmem>>, vector<1x32xf32>
    tpu.vector_store %arg10[%c0_109, %c0_110], %126 {strides = array<i32>} : memref<4x32xf32, #tpu.memory_space<vmem>>, vector<1x32xf32>,
    %c1_111 = arith.constant 1 : index
    %128 = memref.load %arg1[%c1_111] : memref<4xi32, #tpu.memory_space<smem>>
    %129 = arith.index_cast %128 : i32 to index
    %c0_112 = arith.constant 0 : index
    %130 = vector.load %arg9[%129, %c0_112] : memref<16x32xf32, #tpu.memory_space<vmem>>, vector<1x32xf32>
    %c1_113 = arith.constant 1 : index
    %c0_114 = arith.constant 0 : index
    %131 = vector.load %arg10[%c1_113, %c0_114] : memref<4x32xf32, #tpu.memory_space<vmem>>, vector<1x32xf32>
    tpu.vector_store %arg10[%c1_113, %c0_114], %130 {strides = array<i32>} : memref<4x32xf32, #tpu.memory_space<vmem>>, vector<1x32xf32>,
    %c2_115 = arith.constant 2 : index
    %132 = memref.load %arg1[%c2_115] : memref<4xi32, #tpu.memory_space<smem>>
    %133 = arith.index_cast %132 : i32 to index
    %c0_116 = arith.constant 0 : index
    %134 = vector.load %arg9[%133, %c0_116] : memref<16x32xf32, #tpu.memory_space<vmem>>, vector<1x32xf32>
    %c2_117 = arith.constant 2 : index
    %c0_118 = arith.constant 0 : index
    %135 = vector.load %arg10[%c2_117, %c0_118] : memref<4x32xf32, #tpu.memory_space<vmem>>, vector<1x32xf32>
    tpu.vector_store %arg10[%c2_117, %c0_118], %134 {strides = array<i32>} : memref<4x32xf32, #tpu.memory_space<vmem>>, vector<1x32xf32>,
    %c3_119 = arith.constant 3 : index
    %136 = memref.load %arg1[%c3_119] : memref<4xi32, #tpu.memory_space<smem>>
    %137 = arith.index_cast %136 : i32 to index
    %c0_120 = arith.constant 0 : index
    %138 = vector.load %arg9[%137, %c0_120] : memref<16x32xf32, #tpu.memory_space<vmem>>, vector<1x32xf32>
    %c3_121 = arith.constant 3 : index
    %c0_122 = arith.constant 0 : index
    %139 = vector.load %arg10[%c3_121, %c0_122] : memref<4x32xf32, #tpu.memory_space<vmem>>, vector<1x32xf32>
    tpu.vector_store %arg10[%c3_121, %c0_122], %138 {strides = array<i32>} : memref<4x32xf32, #tpu.memory_space<vmem>>, vector<1x32xf32>,
    %c0_123 = arith.constant 0 : index
    %140 = memref.load %arg2[%c0_123] : memref<4xi32, #tpu.memory_space<smem>>
    %141 = arith.index_cast %140 : i32 to index
    %c0_124 = arith.constant 0 : index
    %142 = vector.load %arg9[%141, %c0_124] : memref<16x32xf32, #tpu.memory_space<vmem>>, vector<1x32xf32>
    %c0_125 = arith.constant 0 : index
    %c0_126 = arith.constant 0 : index
    %143 = vector.load %arg11[%c0_125, %c0_126] : memref<4x32xf32, #tpu.memory_space<vmem>>, vector<1x32xf32>
    tpu.vector_store %arg11[%c0_125, %c0_126], %142 {strides = array<i32>} : memref<4x32xf32, #tpu.memory_space<vmem>>, vector<1x32xf32>,
    %c1_127 = arith.constant 1 : index
    %144 = memref.load %arg2[%c1_127] : memref<4xi32, #tpu.memory_space<smem>>
    %145 = arith.index_cast %144 : i32 to index
    %c0_128 = arith.constant 0 : index
    %146 = vector.load %arg9[%145, %c0_128] : memref<16x32xf32, #tpu.memory_space<vmem>>, vector<1x32xf32>
    %c1_129 = arith.constant 1 : index
    %c0_130 = arith.constant 0 : index
    %147 = vector.load %arg11[%c1_129, %c0_130] : memref<4x32xf32, #tpu.memory_space<vmem>>, vector<1x32xf32>
    tpu.vector_store %arg11[%c1_129, %c0_130], %146 {strides = array<i32>} : memref<4x32xf32, #tpu.memory_space<vmem>>, vector<1x32xf32>,
    %c2_131 = arith.constant 2 : index
    %148 = memref.load %arg2[%c2_131] : memref<4xi32, #tpu.memory_space<smem>>
    %149 = arith.index_cast %148 : i32 to index
    %c0_132 = arith.constant 0 : index
    %150 = vector.load %arg9[%149, %c0_132] : memref<16x32xf32, #tpu.memory_space<vmem>>, vector<1x32xf32>
    %c2_133 = arith.constant 2 : index
    %c0_134 = arith.constant 0 : index
    %151 = vector.load %arg11[%c2_133, %c0_134] : memref<4x32xf32, #tpu.memory_space<vmem>>, vector<1x32xf32>
    tpu.vector_store %arg11[%c2_133, %c0_134], %150 {strides = array<i32>} : memref<4x32xf32, #tpu.memory_space<vmem>>, vector<1x32xf32>,
    %c3_135 = arith.constant 3 : index
    %152 = memref.load %arg2[%c3_135] : memref<4xi32, #tpu.memory_space<smem>>
    %153 = arith.index_cast %152 : i32 to index
    %c0_136 = arith.constant 0 : index
    %154 = vector.load %arg9[%153, %c0_136] : memref<16x32xf32, #tpu.memory_space<vmem>>, vector<1x32xf32>
    %c3_137 = arith.constant 3 : index
    %c0_138 = arith.constant 0 : index
    %155 = vector.load %arg11[%c3_137, %c0_138] : memref<4x32xf32, #tpu.memory_space<vmem>>, vector<1x32xf32>
    tpu.vector_store %arg11[%c3_137, %c0_138], %154 {strides = array<i32>} : memref<4x32xf32, #tpu.memory_space<vmem>>, vector<1x32xf32>,
    return
  }
}

</mosaic_0001>

<bundles_post_ra>
// kernel: net2_forward.1
= control target key start
LH: loop header
LB: loop body
LE: loop exit
PB: predicated region body
PF: predicated region fallthrough
CT: control target
= control target key end

     0   :  { %17 = vsyncpa [#allocation5], 0  ;;  %s1281_s0 = inlined_call_operand.vmem [shape: s32[16], index: 0, kind: input, shape index: {}]   ;;  %s1282_s1 = inlined_call_operand.vmem [shape: s32[4], index: 1, kind: input, shape index: {}]   ;;  %s1283_s2 = inlined_call_operand.vmem [shape: s32[4], index: 2, kind: input, shape index: {}]   ;;  %s1284_s3 = inlined_call_operand.hbm [shape: f32[17,32], index: 3, kind: input, shape index: {}]   ;;  %s1285_s4 = inlined_call_operand.hbm [shape: f32[16,16], index: 4, kind: input, shape index: {}]   ;;  %s1286_s5 = inlined_call_operand.hbm [shape: f32[16,16], index: 5, kind: input, shape index: {}]   ;;  %s1287_s6 = inlined_call_operand.hbm [shape: f32[4,32,32], index: 6, kind: input, shape index: {}]   ;;  %s1288_s7 = inlined_call_operand.hbm [shape: f32[4,32,32], index: 7, kind: input, shape index: {}]   ;;  %s1289_s8 = inlined_call_operand.hbm [shape: f32[4,1,32], index: 8, kind: input, shape index: {}]   ;;  %s1290_s9 = inlined_call_operand.hbm [shape: f32[16,32], index: 9, kind: output, shape index: {0}]   ;;  %s1291_s10 = inlined_call_operand.hbm [shape: f32[4,32], index: 10, kind: output, shape index: {1}]   ;;  %s1292_s11 = inlined_call_operand.hbm [shape: f32[4,32], index: 11, kind: output, shape index: {2}]  }
   0x1   :  { %18 = vsyncpa [#allocation7], 0 }
   0x2   :  { %19 = vsyncpa [#allocation3], 0 }
   0x3   :  { %20 = vsyncpa [#allocation11], 0 }
   0x4   :  { %21 = vsyncpa [#allocation14], 0 }
   0x5   :  { %22 = vsyncpa [#allocation17], 0 }
   0x6   :  { %23 = vsyncpa [#allocation4], 0  ;;  %s39_s19 = sshll.u32 %s1282_s1, 4  ;;  %s40_s19 = int_to_ptr.vmem [resolvable:$true] %s39_s19 }
   0x7   :  { %24 = vsyncpa [#allocation20], 0  ;;  %s1095_s20 = smov [#allocation6]   ;;  %s69_s23 = sshll.u32 %s1285_s4, 4  ;;  %s70_s23 = int_to_ptr.hbm [resolvable:$true] %s69_s23 }
   0x8   :  { %42 = dma.vmem_to_smem %s40_s19, 16, %s1095_s20, [#allocation7]  }
   0x9   :  { %s1096_s24 = smov [#allocation10]   ;;  %s95_s28 = sshll.u32 %s1287_s6, 4  ;;  %s96_s28 = int_to_ptr.hbm [resolvable:$true] %s95_s28 }
   0xa   :  { %s71_s25 = sshll.u32 %s1096_s24, 4  ;;  %s1097_s29 = smov 128   ;;  %s72_s25 = int_to_ptr.vmem [resolvable:$true] %s71_s25 }
   0xb   :  { %s1098_s30 = smov 8   ;;  %s30_s13 = sshll.u32 %s1281_s0, 4  ;;  %s31_s13 = int_to_ptr.vmem [resolvable:$true] %s30_s13 }
   0xc   :  { %77 = dma.hbm_to_vmem [thread:$0]  %s70_s23, 256, %s72_s25, [#allocation11], %s1097_s29, %s1097_s29, %s1098_s30  }
   0xd   :  { %s1099_s4 = smov [#allocation13]   ;;  %s1100_s6 = smov [#allocation2]  }
   0xe   :  { %s97_s14 = sshll.u32 %s1099_s4, 4  ;;  %s48_s17 = sshll.u32 %s1283_s2, 4  ;;  %s98_s14 = int_to_ptr.vmem [resolvable:$true] %s97_s14  ;;  %s49_s17 = int_to_ptr.vmem [resolvable:$true] %s48_s17 }
   0xf   :  { %103 = dma.hbm_to_vmem [thread:$0]  %s96_s28, 2048, %s98_s14, [#allocation14], %s1097_s29, %s1097_s29, %s1098_s30  }
  0x10   :  { %33 = dma.vmem_to_smem %s31_s13, 16, %s1100_s6, [#allocation5]  }
  0x11   :  { %s56_s20 = sshll.u32 %s1284_s3, 4  ;;  %s1101_s0 = smov [#allocation8]   ;;  %s57_s20 = int_to_ptr.hbm [resolvable:$true] %s56_s20 }
  0x12   :  { %51 = dma.vmem_to_smem %s49_s17, 16, %s1101_s0, [#allocation7]  }
  0x13   :  { %s1102_s21 = smov [#allocation9]   ;;  %s82_s25 = sshll.u32 %s1286_s5, 4  ;;  %s83_s25 = int_to_ptr.hbm [resolvable:$true] %s82_s25 }
  0x14   :  { %s58_s22 = sshll.u32 %s1102_s21, 4  ;;  %s108_s27 = sshll.u32 %s1288_s7, 4  ;;  %s59_s22 = int_to_ptr.vmem [resolvable:$true] %s58_s22  ;;  %s109_s27 = int_to_ptr.hbm [resolvable:$true] %s108_s27 }
  0x15   :  { %64 = dma.hbm_to_vmem [thread:$0]  %s57_s20, 384, %s59_s22, [#allocation3], %s1097_s29, %s1097_s29, %s1098_s30  }
  0x16   :  { %s1103_s3 = smov [#allocation12]   ;;  %s1104_s1 = smov [#allocation15]  }
  0x17   :  { %s84_s28 = sshll.u32 %s1103_s3, 4  ;;  %s110_s5 = sshll.u32 %s1104_s1, 4  ;;  %s85_s28 = int_to_ptr.vmem [resolvable:$true] %s84_s28  ;;  %s111_s5 = int_to_ptr.vmem [resolvable:$true] %s110_s5 }
  0x18   :  { %90 = dma.hbm_to_vmem [thread:$0]  %s83_s25, 256, %s85_s28, [#allocation11], %s1097_s29, %s1097_s29, %s1098_s30  }
  0x19   :  { %s121_s4 = sshll.u32 %s1289_s8, 4  ;;  %s1105_s7 = smov [#allocation16]   ;;  %s122_s4 = int_to_ptr.hbm [resolvable:$true] %s121_s4 }
  0x1a   :  { %116 = dma.hbm_to_vmem [thread:$0]  %s109_s27, 2048, %s111_s5, [#allocation14], %s1097_s29, %s1097_s29, %s1098_s30  }
  0x1b   :  { %s123_s14 = sshll.u32 %s1105_s7, 4  ;;  %s1106_s6 = smov 16   ;;  %s124_s14 = int_to_ptr.vmem [resolvable:$true] %s123_s14 }
  0x1c   :  { %s1107_s15 = smov 1  }
  0x1d   :  { %129 = dma.hbm_to_vmem [thread:$0]  %s122_s4, 64, %s124_s14, [#allocation17], %s1106_s6, %s1106_s6, %s1107_s15  }
  0x1e   :  { %1079 = dma.done.wait [#allocation5], 16  }
  0x1f   :  { %1080 = vsyncadd [#allocation5], 4294967280 }
  0x20   :  { %1081 = dma.done.wait [#allocation7], 32  }
  0x21   :  { %1082 = vsyncadd [#allocation7], 4294967264 }
  0x22   :  { %1083 = dma.done.wait [#allocation3], 384  }
  0x23   :  { %1084 = vsyncadd [#allocation3], 4294966912 }
  0x24   :  { %1085 = dma.done.wait [#allocation11], 512  }
  0x25   :  { %1086 = vsyncadd [#allocation11], 4294966784 }
  0x26   :  { %1087 = dma.done.wait [#allocation14], 4096  }
  0x27   :  { %1088 = vsyncadd [#allocation14], 4294963200 }
  0x28   :  { %1089 = dma.done.wait [#allocation17], 64  }
  0x29   :  { %1090 = vsyncadd [#allocation17], 4294967232 }
  0x2a   :  { %166 = sfence }
  0x2b   :  { %s769_s8 = sld [smem:[#allocation2 + $0x8]]  ;;  %vm170_vm0 = vcmask 253952   ;;  %v271_v8 = vld [vmem:[#allocation13 + $0x18] sm:$0xff]  ;;  %v270_v9 = vld [vmem:[#allocation13 + $0x10] sm:$0xff]  ;;  %v269_v10 = vld [vmem:[#allocation13 + $0x8] sm:$0xff]  ;;  %vm238_vm1 = vcmask 130048  }
  0x2c   :  { %s770_s16 = sld [smem:[#allocation2 + $0x9]]  ;;  %324 = vmatpush.msra.mxu2 %v271_v8  ;;  %v234_v20 = vld [vmem:[#allocation10] sm:$0xff]  ;;  %v235_v22 = vld [vmem:[#allocation10 + $0x8] sm:$0xff]  ;;  %v275_v23 = vld [vmem:[#allocation15 + $0x18] sm:$0xff]  ;;  %vm276_vm2 = vcmask 261120  }
  0x2d   :  { %s771_s17 = sld [smem:[#allocation2 + $0xa]]  ;;  %v268_v24 = vld [vmem:[#allocation13] sm:$0xff]  ;;  %295 = vmatpush.msra.mxu1 %v275_v23  ;;  %v274_v25 = vld [vmem:[#allocation15 + $0x10] sm:$0xff]  ;;  %v273_v26 = vld [vmem:[#allocation15 + $0x8] sm:$0xff] }
  0x2e   :  { %s772_s18 = sld [smem:[#allocation2 + $0xb]]  ;;  %325 = vmatpush.msra.mxu2 %v270_v9  ;;  %v272_v27 = vld [vmem:[#allocation15] sm:$0xff]  ;;  %v375_v30 = vld [vmem:[#allocation15 + $0x38] sm:$0xff]  ;;  %v374_v31 = vld [vmem:[#allocation15 + $0x30] sm:$0xff] }
  0x2f   :  { %s773_s19 = sld [smem:[#allocation2 + $0xc]]  ;;  %296 = vmatpush.msra.mxu1 %v274_v25  ;;  %v373_v32 = vld [vmem:[#allocation15 + $0x28] sm:$0xff]  ;;  %v372_v33 = vld [vmem:[#allocation15 + $0x20] sm:$0xff]  ;;  %v370_v45 = vld [vmem:[#allocation13 + $0x38] sm:$0xff] }
  0x30   :  { %s774_s20 = sld [smem:[#allocation2 + $0xd]]  ;;  %326 = vmatpush.msra.mxu2 %v269_v10  ;;  %v823_v35 = vld [vmem:[#allocation16] ss:$0 sm:$0xff]  ;;  %v369_v46 = vld [vmem:[#allocation13 + $0x30] sm:$0xff]  ;;  %v368_v47 = vld [vmem:[#allocation13 + $0x28] sm:$0xff] }
  0x31   :  { %s775_s0 = sld [smem:[#allocation2 + $0xe]]  ;;  %s201_s21 = scalar_lea.vmem [#allocation9], %s769_s8  ;;  %297 = vmatpush.msra.mxu1 %v273_v26  ;;  %v367_v48 = vld [vmem:[#allocation13 + $0x20] sm:$0xff]  ;;  %v481_v51 = vld [vmem:[#allocation15 + $0x58] sm:$0xff]  ;;  %v480_v52 = vld [vmem:[#allocation15 + $0x50] sm:$0xff] }
  0x32   :  { %v202_v0 = vld [vmem:[%s201_s21] sm:$0x1]  ;;  %s776_s22 = sld [smem:[#allocation2 + $0xf]]  ;;  %s205_s23 = scalar_lea.vmem [#allocation9], %s770_s16  ;;  %327 = vmatpush.msra.mxu2 %v268_v24  ;;  %v478_v54 = vld [vmem:[#allocation15 + $0x40] sm:$0xff]  ;;  %v476_v55 = vld [vmem:[#allocation13 + $0x58] sm:$0xff] }
  0x33   :  { %203 = vst.msk [vmem:[#allocation18 + $0x8] sm:$0x1] %vm170_vm0, %v202_v0  ;;  %v206_v1 = vld [vmem:[%s205_s23] sm:$0x1]  ;;  %s209_s24 = scalar_lea.vmem [#allocation9], %s771_s17  ;;  %s167_s28 = sld [smem:[#allocation2]]  ;;  %298 = vmatpush.msra.mxu1 %v272_v27 }
  0x34   :  { %207 = vst.msk [vmem:[#allocation18 + $0x9] sm:$0x1] %vm170_vm0, %v206_v1  ;;  %v210_v2 = vld [vmem:[%s209_s24] sm:$0x1]  ;;  %s213_s25 = scalar_lea.vmem [#allocation9], %s772_s18  ;;  %s762_s1 = sld [smem:[#allocation2 + $0x1]]  ;;  %500 = vmatpush.msrb.mxu2 %v481_v51 }
  0x35   :  { %211 = vst.msk [vmem:[#allocation18 + $0xa] sm:$0x1] %vm170_vm0, %v210_v2  ;;  %v214_v3 = vld [vmem:[%s213_s25] sm:$0x1]  ;;  %s217_s2 = scalar_lea.vmem [#allocation9], %s773_s19  ;;  %s763_s5 = sld [smem:[#allocation2 + $0x2]] }
  0x36   :  { %215 = vst.msk [vmem:[#allocation18 + $0xb] sm:$0x1] %vm170_vm0, %v214_v3  ;;  %v218_v4 = vld [vmem:[%s217_s2] sm:$0x1]  ;;  %s221_s26 = scalar_lea.vmem [#allocation9], %s774_s20  ;;  %s764_s12 = sld [smem:[#allocation2 + $0x3]]  ;;  %501 = vmatpush.msrb.mxu2 %v480_v52 }
  0x37   :  { %219 = vst.msk [vmem:[#allocation18 + $0xc] sm:$0x1] %vm170_vm0, %v218_v4  ;;  %v222_v5 = vld [vmem:[%s221_s26] sm:$0x1]  ;;  %s225_s27 = scalar_lea.vmem [#allocation9], %s775_s0  ;;  %s765_s13 = sld [smem:[#allocation2 + $0x4]] }
  0x38   :  { %223 = vst.msk [vmem:[#allocation18 + $0xd] sm:$0x1] %vm170_vm0, %v222_v5  ;;  %v226_v6 = vld [vmem:[%s225_s27] sm:$0x1]  ;;  %s229_s3 = scalar_lea.vmem [#allocation9], %s776_s22  ;;  %s766_s4 = sld [smem:[#allocation2 + $0x5]] }
  0x39   :  { %227 = vst.msk [vmem:[#allocation18 + $0xe] sm:$0x1] %vm170_vm0, %v226_v6  ;;  %v230_v7 = vld [vmem:[%s229_s3] sm:$0x1]  ;;  %s767_s7 = sld [smem:[#allocation2 + $0x6]]  ;;  %s168_s14 = scalar_lea.vmem [#allocation9], %s167_s28 }
  0x3a   :  { %231 = vst.msk [vmem:[#allocation18 + $0xf] sm:$0x1] %vm170_vm0, %v230_v7  ;;  %v169_v11 = vld [vmem:[%s168_s14] sm:$0x1]  ;;  %s768_s6 = sld [smem:[#allocation2 + $0x7]]  ;;  %s173_s15 = scalar_lea.vmem [#allocation9], %s762_s1 }
  0x3b   :  { %171 = vst.msk [vmem:[#allocation18] sm:$0x1] %vm170_vm0, %v169_v11  ;;  %v174_v13 = vld [vmem:[%s173_s15] sm:$0x1]  ;;  %s177_s8 = scalar_lea.vmem [#allocation9], %s763_s5  ;;  %v236_v3 = vld [vmem:[#allocation12] sm:$0xff] }
  0x3c   :  { %175 = vst.msk [vmem:[#allocation18 + $0x1] sm:$0x1] %vm170_vm0, %v174_v13  ;;  %v178_v14 = vld [vmem:[%s177_s8] sm:$0x1]  ;;  %s181_s16 = scalar_lea.vmem [#allocation9], %s764_s12  ;;  %v237_v4 = vld [vmem:[#allocation12 + $0x8] sm:$0xff] }
  0x3d   :  { %179 = vst.msk [vmem:[#allocation18 + $0x2] sm:$0x1] %vm170_vm0, %v178_v14  ;;  %v182_v15 = vld [vmem:[%s181_s16] sm:$0x1]  ;;  %s185_s17 = scalar_lea.vmem [#allocation9], %s765_s13  ;;  %v475_v5 = vld [vmem:[#allocation13 + $0x50] sm:$0xff] }
  0x3e   :  { %183 = vst.msk [vmem:[#allocation18 + $0x3] sm:$0x1] %vm170_vm0, %v182_v15  ;;  %v186_v16 = vld [vmem:[%s185_s17] sm:$0x1]  ;;  %s189_s18 = scalar_lea.vmem [#allocation9], %s766_s4  ;;  %v473_v7 = vld [vmem:[#allocation13 + $0x40] sm:$0xff] }
  0x3f   :  { %187 = vst.msk [vmem:[#allocation18 + $0x4] sm:$0x1] %vm170_vm0, %v186_v16  ;;  %v190_v17 = vld [vmem:[%s189_s18] sm:$0x1]  ;;  %s193_s19 = scalar_lea.vmem [#allocation9], %s767_s7  ;;  %v581_v10 = vld [vmem:[#allocation15 + $0x78] sm:$0xff] }
  0x40   :  { %191 = vst.msk [vmem:[#allocation18 + $0x5] sm:$0x1] %vm170_vm0, %v190_v17  ;;  %v194_v18 = vld [vmem:[%s193_s19] sm:$0x1]  ;;  %s197_s20 = scalar_lea.vmem [#allocation9], %s768_s6  ;;  %v580_v11 = vld [vmem:[#allocation15 + $0x70] sm:$0xff] }
  0x41   :  { %v233_v12 = vld [vmem:[#allocation18 + $0x8] sm:$0xff]  ;;  %195 = vst.msk [vmem:[#allocation18 + $0x6] sm:$0x1] %vm170_vm0, %v194_v18  ;;  %v198_v19 = vld [vmem:[%s197_s20] sm:$0x1]  ;;  %v578_v13 = vld [vmem:[#allocation15 + $0x60] sm:$0xff] }
  0x42   :  { %259 = vmatpush.msra.mxu0 %v233_v12  ;;  %199 = vst.msk [vmem:[#allocation18 + $0x7] sm:$0x1] %vm170_vm0, %v198_v19  ;;  %v479_v53 = vld [vmem:[#allocation15 + $0x48] sm:$0xff]  ;;  %v824_v57 = vld [vmem:[#allocation16 + $0x1] ss:$0 sm:$0xff]  ;;  %v576_v25 = vld [vmem:[#allocation13 + $0x78] sm:$0xff] }
  0x43   :  { %502 = vmatpush.msrb.mxu2 %v479_v53  ;;  %v474_v6 = vld [vmem:[#allocation13 + $0x48] sm:$0xff]  ;;  %v825_v15 = vld [vmem:[#allocation16 + $0x2] ss:$0 sm:$0xff]  ;;  %v575_v26 = vld [vmem:[#allocation13 + $0x70] sm:$0xff]  ;;  %s651_s0 = sld [smem:[#allocation6]]  ;;  %s1108_s24 = smov [#allocation18]  }
  0x44   :  { %v574_v27 = vld [vmem:[#allocation13 + $0x68] sm:$0xff]  ;;  %s801_s21 = sld [smem:[#allocation6 + $0x1]]  ;;  %s687_s25 = sshll.u32 %s1108_s24, 4  ;;  %s688_s25 = int_to_ptr.vmem [resolvable:$true] %s687_s25 }
  0x45   :  { %503 = vmatpush.msrb.mxu2 %v478_v54  ;;  %s802_s22 = sld [smem:[#allocation6 + $0x2]]  ;;  %s689_s27 = sshll.u32 %s1290_s9, 4  ;;  %s690_s27 = int_to_ptr.hbm [resolvable:$true] %s689_s27 }
  0x46   :  { %s803_s23 = sld [smem:[#allocation6 + $0x3]]  ;;  %s1109_s12 = smov [#allocation19]  }
  0x47   :  { %s667_s3 = sld [smem:[#allocation8]]  ;;  %s701_s13 = sshll.u32 %s1109_s12, 4  ;;  %s702_s13 = int_to_ptr.vmem [resolvable:$true] %s701_s13 }
  0x48   :  { %s804_s28 = sld [smem:[#allocation8 + $0x1]]  ;;  %s703_s7 = sshll.u32 %s1291_s10, 4  ;;  %s704_s7 = int_to_ptr.hbm [resolvable:$true] %s703_s7 }
  0x49   :  { %v232_v21 = vld [vmem:[#allocation18] sm:$0xff]  ;;  %s1257_s1 = sld [smem:[#allocation8 + $0x2]]  ;;  %s652_s14 = scalar_lea.vmem [#allocation18], %s651_s0 }
  0x4a   :  { %260 = vmatpush.msra.mxu0 %v232_v21  ;;  %779 = vmatmul.msk.f32.vlgmr.msra.gmra.mxu1 %vm276_vm2, %v232_v21  ;;  %s1260_s5 = sld [smem:[#allocation8 + $0x3]]  ;;  %s656_s6 = scalar_lea.vmem [#allocation18], %s801_s21 }
  0x4b   :  { %777 = vmatmul.msk.f32.vlgmr.msra.gmra.mxu0 %vm238_vm1, %v234_v20  ;;  %s660_s15 = scalar_lea.vmem [#allocation18], %s802_s22  ;;  %s714_s19 = sshll.u32 %s1292_s11, 4  ;;  %s715_s19 = int_to_ptr.hbm [resolvable:$true] %s714_s19 }
  0x4c   :  { %394 = vmatpush.msrb.mxu0 %v375_v30  ;;  %s664_s8 = scalar_lea.vmem [#allocation18], %s803_s23 }
  0x4e   :  { %395 = vmatpush.msrb.mxu0 %v374_v31  ;;  %s672_s10 = scalar_lea.vmem [#allocation18], %s804_s28 }
  0x4f   :  { %s676_s20 = scalar_lea.vmem [#allocation18], %s1257_s1 }
  0x50   :  { %396 = vmatpush.msrb.mxu0 %v373_v32  ;;  %v826_v32 = vld [vmem:[#allocation16 + $0x3] ss:$0 sm:$0xff]  ;;  %s680_s0 = scalar_lea.vmem [#allocation18], %s1260_s5 }
  0x52   :  { %780 = vmatmul.msk.f32.gmra.mxu1 %vm276_vm2, %v233_v12  ;;  %397 = vmatpush.msrb.mxu0 %v372_v33  ;;  %v579_v12 = vld [vmem:[#allocation15 + $0x68] sm:$0xff] }
  0x53   :  { %778 = vmatmul.msk.f32.gmra.mxu0 %vm238_vm1, %v235_v22 }
  0x54   :  { %529 = vmatpush.msra.mxu0 %v476_v55 }
  0x56   :  { %530 = vmatpush.msra.mxu0 %v475_v5 }
  0x58   :  { %531 = vmatpush.msra.mxu0 %v474_v6 }
  0x5a   :  { %532 = vmatpush.msra.mxu0 %v473_v7 }
  0xc7   :  { %v300_v34 = vpop.f32.mrf.mxu1 }
  0xc8   :  { %v262_v28 = vpop.f32.mrf.mxu0 }
  0xc9   :  { %781 = vmatmul.msk.f32.vlgmr.msra.gmra.mxu2 %vm276_vm2, %v262_v28  ;;  %v573_v28 = vld [vmem:[#allocation13 + $0x60] sm:$0xff] }
  0xca   :  { %629 = vmatpush.msra.mxu2 %v576_v25 }
  0xcc   :  { %630 = vmatpush.msra.mxu2 %v575_v26 }
  0xce   :  { %631 = vmatpush.msra.mxu2 %v574_v27 }
  0xcf   :  { %v303_v40 = vpop.f32.mrf.mxu1 }
  0xd0   :  { %v265_v29 = vpop.f32.mrf.mxu0  ;;  %632 = vmatpush.msra.mxu2 %v573_v28 }
  0xd1   :  { %782 = vmatmul.msk.f32.gmra.mxu2 %vm276_vm2, %v265_v29 }
 0x14c   :  { %v329_v36 = vpop.f32.mrf.mxu2 }
 0x14d   :  { %v330_v37 = vadd.f32 %v329_v36, %v300_v34 }
 0x14f   :  { %v339_v38 = vadd.f32 %v823_v35, %v330_v37 }
 0x151   :  { %v341_v39 = vmax.f32 %v339_v38, 0.0 }
 0x153   :  { %785 = vmatmul.msk.f32.vlgmr.msrb.gmra.mxu0 %vm276_vm2, %v341_v39 }
 0x154   :  { %v332_v41 = vpop.f32.mrf.mxu2 }
 0x155   :  { %v333_v42 = vadd.f32 %v332_v41, %v303_v40 }
 0x157   :  { %v340_v43 = vadd.f32 %v823_v35, %v333_v42 }
 0x159   :  { %v342_v44 = vmax.f32 %v340_v43, 0.0 }
 0x15b   :  { %357 = vmatpush.msra.mxu3 %v342_v44  ;;  %786 = vmatmul.msk.f32.gmra.mxu0 %vm276_vm2, %v342_v44 }
 0x15d   :  { %358 = vmatpush.msra.mxu3 %v341_v39 }
 0x15e   :  { %783 = vmatmul.msk.f32.vlgmr.msra.gmra.mxu3 %vm238_vm1, %v234_v20 }
 0x15f   :  { %423 = vmatpush.msrb.mxu3 %v370_v45 }
 0x161   :  { %424 = vmatpush.msrb.mxu3 %v369_v46 }
 0x163   :  { %425 = vmatpush.msrb.mxu3 %v368_v47 }
 0x165   :  { %426 = vmatpush.msrb.mxu3 %v367_v48 }
 0x166   :  { %784 = vmatmul.msk.f32.gmra.mxu3 %vm238_vm1, %v235_v22 }
 0x1d0   :  { %v399_v56 = vpop.f32.mrf.mxu0 }
 0x1d8   :  { %v402_v62 = vpop.f32.mrf.mxu0 }
 0x1e1   :  { %v360_v49 = vpop.f32.mrf.mxu3 }
 0x1e2   :  { %787 = vmatmul.msk.f32.vlgmr.msrb.gmra.mxu3 %vm276_vm2, %v360_v49 }
 0x1e9   :  { %v363_v50 = vpop.f32.mrf.mxu3 }
 0x1ea   :  { %788 = vmatmul.msk.f32.gmra.mxu3 %vm276_vm2, %v363_v50 }
 0x265   :  { %v428_v58 = vpop.f32.mrf.mxu3 }
 0x266   :  { %v429_v59 = vadd.f32 %v428_v58, %v399_v56 }
 0x268   :  { %v439_v60 = vadd.f32 %v824_v57, %v429_v59 }
 0x26a   :  { %v441_v61 = vmax.f32 %v439_v60, 0.0 }
 0x26c   :  { %791 = vmatmul.msk.f32.vlgmr.msrb.gmra.mxu2 %vm276_vm2, %v441_v61 }
 0x26d   :  { %v431_v63 = vpop.f32.mrf.mxu3 }
 0x26e   :  { %v432_v0 = vadd.f32 %v431_v63, %v402_v62 }
 0x270   :  { %v440_v1 = vadd.f32 %v824_v57, %v432_v0 }
 0x272   :  { %v442_v2 = vmax.f32 %v440_v1, 0.0 }
 0x274   :  { %463 = vmatpush.msrb.mxu1 %v442_v2  ;;  %792 = vmatmul.msk.f32.gmra.mxu2 %vm276_vm2, %v442_v2 }
 0x276   :  { %464 = vmatpush.msrb.mxu1 %v441_v61 }
 0x277   :  { %789 = vmatmul.msk.f32.vlgmr.msrb.gmra.mxu1 %vm238_vm1, %v236_v3 }
 0x278   :  { %600 = vmatpush.msra.mxu1 %v581_v10 }
 0x27a   :  { %601 = vmatpush.msra.mxu1 %v580_v11 }
 0x27c   :  { %602 = vmatpush.msra.mxu1 %v579_v12 }
 0x27e   :  { %603 = vmatpush.msra.mxu1 %v578_v13 }
 0x27f   :  { %790 = vmatmul.msk.f32.gmra.mxu1 %vm238_vm1, %v237_v4 }
 0x2ef   :  { %v505_v14 = vpop.f32.mrf.mxu2 }
 0x2f4   :  { %v466_v8 = vpop.f32.mrf.mxu1 }
 0x2f5   :  { %793 = vmatmul.msk.f32.vlgmr.msra.gmra.mxu0 %vm276_vm2, %v466_v8 }
 0x2f7   :  { %v508_v20 = vpop.f32.mrf.mxu2 }
 0x2fc   :  { %v469_v9 = vpop.f32.mrf.mxu1 }
 0x2fd   :  { %794 = vmatmul.msk.f32.gmra.mxu0 %vm276_vm2, %v469_v9 }
 0x372   :  { %v534_v16 = vpop.f32.mrf.mxu0 }
 0x373   :  { %v535_v17 = vadd.f32 %v534_v16, %v505_v14 }
 0x375   :  { %v545_v18 = vadd.f32 %v825_v15, %v535_v17 }
 0x377   :  { %v547_v19 = vmax.f32 %v545_v18, 0.0 }
 0x379   :  { %797 = vmatmul.msk.f32.vlgmr.msra.gmra.mxu1 %vm276_vm2, %v547_v19 }
 0x37a   :  { %v537_v21 = vpop.f32.mrf.mxu0 }
 0x37b   :  { %v538_v22 = vadd.f32 %v537_v21, %v508_v20 }
 0x37d   :  { %v546_v23 = vadd.f32 %v825_v15, %v538_v22 }
 0x37f   :  { %v548_v24 = vmax.f32 %v546_v23, 0.0 }
 0x381   :  { %563 = vmatpush.msra.mxu3 %v548_v24  ;;  %798 = vmatmul.msk.f32.gmra.mxu1 %vm276_vm2, %v548_v24 }
 0x383   :  { %564 = vmatpush.msra.mxu3 %v547_v19 }
 0x384   :  { %795 = vmatmul.msk.f32.vlgmr.msra.gmra.mxu3 %vm238_vm1, %v236_v3 }
 0x38c   :  { %796 = vmatmul.msk.f32.gmra.mxu3 %vm238_vm1, %v237_v4 }
 0x3f6   :  { %v605_v31 = vpop.f32.mrf.mxu1 }
 0x3fe   :  { %v608_v37 = vpop.f32.mrf.mxu1 }
 0x407   :  { %v566_v29 = vpop.f32.mrf.mxu3 }
 0x408   :  { %799 = vmatmul.msk.f32.vlgmr.msra.gmra.mxu2 %vm276_vm2, %v566_v29 }
 0x40f   :  { %v569_v30 = vpop.f32.mrf.mxu3 }
 0x410   :  { %800 = vmatmul.msk.f32.gmra.mxu2 %vm276_vm2, %v569_v30 }
 0x48b   :  { %v634_v33 = vpop.f32.mrf.mxu2 }
 0x48c   :  { %v635_v34 = vadd.f32 %v634_v33, %v605_v31 }
 0x48e   :  { %v645_v35 = vadd.f32 %v826_v32, %v635_v34 }
 0x490   :  { %v647_v36 = vmax.f32 %v645_v35, 0.0 }
 0x492   :  { %649 = vst.msk [vmem:[#allocation18] sm:$0xff] %vm276_vm2, %v647_v36 }
 0x493   :  { %v637_v38 = vpop.f32.mrf.mxu2 }
 0x494   :  { %v638_v39 = vadd.f32 %v637_v38, %v608_v37 }
 0x496   :  { %v646_v40 = vadd.f32 %v826_v32, %v638_v39 }
 0x498   :  { %v648_v41 = vmax.f32 %v646_v40, 0.0 }
 0x49a   :  { %650 = vst.msk [vmem:[#allocation18 + $0x8] sm:$0xff] %vm276_vm2, %v648_v41 }
 0x49b   :  { %695 = dma.vmem_to_hbm [thread:$0]  %s688_s25, 256, %s690_s27, [#allocation4], %s1097_s29, %s1097_s29, %s1098_s30  }
 0x49c   :  { %s668_s29 = scalar_lea.vmem [#allocation18], %s667_s3  ;;  %s1110_s30 = smov [#allocation21]  }
 0x49d   :  { %s712_s16 = sshll.u32 %s1110_s30, 4  ;;  %s713_s16 = int_to_ptr.vmem [resolvable:$true] %s712_s16 }
 0x4a1   :  { %v653_v42 = vld [vmem:[%s652_s14] sm:$0x1] }
 0x4a2   :  { %v657_v43 = vld [vmem:[%s656_s6] sm:$0x1]  ;;  %654 = vst.msk [vmem:[#allocation19] sm:$0x1] %vm170_vm0, %v653_v42 }
 0x4a3   :  { %v661_v44 = vld [vmem:[%s660_s15] sm:$0x1]  ;;  %658 = vst.msk [vmem:[#allocation19 + $0x1] sm:$0x1] %vm170_vm0, %v657_v43 }
 0x4a4   :  { %v665_v45 = vld [vmem:[%s664_s8] sm:$0x1]  ;;  %662 = vst.msk [vmem:[#allocation19 + $0x2] sm:$0x1] %vm170_vm0, %v661_v44 }
 0x4a5   :  { %v669_v46 = vld [vmem:[%s668_s29] sm:$0x1]  ;;  %666 = vst.msk [vmem:[#allocation19 + $0x3] sm:$0x1] %vm170_vm0, %v665_v45 }
 0x4a6   :  { %v673_v47 = vld [vmem:[%s672_s10] sm:$0x1]  ;;  %706 = dma.vmem_to_hbm [thread:$0]  %s702_s13, 64, %s704_s7, [#allocation20]   ;;  %670 = vst.msk [vmem:[#allocation21] sm:$0x1] %vm170_vm0, %v669_v46 }
 0x4a7   :  { %v677_v48 = vld [vmem:[%s676_s20] sm:$0x1]  ;;  %674 = vst.msk [vmem:[#allocation21 + $0x1] sm:$0x1] %vm170_vm0, %v673_v47 }
 0x4a8   :  { %v681_v49 = vld [vmem:[%s680_s0] sm:$0x1]  ;;  %678 = vst.msk [vmem:[#allocation21 + $0x2] sm:$0x1] %vm170_vm0, %v677_v48 }
 0x4a9   :  { %682 = vst.msk [vmem:[#allocation21 + $0x3] sm:$0x1] %vm170_vm0, %v681_v49 }
 0x4aa   :  { %717 = dma.vmem_to_hbm [thread:$0]  %s713_s16, 64, %s715_s19, [#allocation20]  }
 0x4ab   :  { %1091 = dma.done.wait [#allocation4], 256  }
 0x4ac   :  { %1092 = vsyncadd [#allocation4], 4294967040 }
 0x4ad   :  { %1093 = dma.done.wait [#allocation20], 128  }
 0x4ae   :  { %1094 = vsyncadd [#allocation20], 4294967168 }
 0x4af   :  { %730 = vsyncpa [#allocation3], 1 }
 0x4b0   :  { %731 = vsyncpa [#allocation11], 1 }
 0x4b1   :  { %732 = vsyncpa [#allocation14], 1 }
 0x4b2   :  { %733 = vsyncpa [#allocation17], 1 }
 0x4b3   :  { %734 = vsyncpa [#allocation4], 1 }
 0x4b4   :  { %735 = vsyncpa [#allocation20], 1 }
 0x4b5   :  { %736 = vsyncpa [#allocation5], 1 }
 0x4b6   :  { %737 = vsyncpa [#allocation7], 1 }

</bundles_post_ra>
